<compile_context>
chip_gen: v5e
topology: v5e:2x2
jax: 0.10.0
libtpu: 0.0.40
codegen_flags: <defaults>
</compile_context>

<pallas_src>
import jax
import jax.numpy as jnp
from jax.experimental import pallas as pl
from jax.experimental.pallas import tpu as pltpu


def _cls_pos_kernel(x_ref, row0_ref, pos_tail_ref, o_ref):
    # x_ref:        (Bt, N, D)   batch tile of patch embeddings
    # row0_ref:     (1, 1, D)    precomputed cls_token + pos_embed[:, 0]
    # pos_tail_ref: (1, N, D)    pos_embed[:, 1:] (cast to x dtype)
    # o_ref:        (Bt, N+1, D)
    bt, _, d = o_ref.shape
    # Sequence row 0: broadcast the batch-independent (cls + pos) row.
    o_ref[:, 0:1, :] = jnp.broadcast_to(row0_ref[...], (bt, 1, d))
    # Sequence rows 1..S-1: elementwise add, pos broadcast over the batch tile.
    # (If a bundle dump shows the vst slot binding on v5e, switch these two
    # stores to a single full-tile store of a concatenated value.)
    o_ref[:, 1:, :] = x_ref[...] + pos_tail_ref[...]


def _pos_only_kernel(x_ref, pos_ref, o_ref):
    # cls=False path: plain broadcast add.
    o_ref[...] = x_ref[...] + pos_ref[...]


def _pick_batch_tile(batch, rows_per_batch, dim, itemsize,
                     budget_bytes=24 * 1024 * 1024, max_bt=128):
    """Largest batch tile whose double-buffered in+out blocks fit the budget."""
    per_batch_row = 2 * rows_per_batch * dim * itemsize  # 2x for double-buffer
    bt = budget_bytes // max(per_batch_row, 1)
    return int(max(1, min(batch, bt, max_bt)))


def cls_and_pos_embed(x, cls_token, pos_embed, drop_ratio=0.0):
    """x: (B, N, D); cls_token: (1, 1, D) or None; pos_embed: (1, S, D)."""
    # TODO(synk): dropout with drop_ratio > 0 needs pltpu.prng_* masking; only
    # the eval / p=0 identity path is implemented.
    assert drop_ratio == 0.0, "dropout not implemented (drop_ratio must be 0)"

    B, N, D = x.shape
    itemsize = jnp.dtype(x.dtype).itemsize
    compiler_params = pltpu.CompilerParams(
        dimension_semantics=("parallel",),
        vmem_limit_bytes=32 * 1024 * 1024,
    )

    if cls_token is None:
        # cls=False branch of the module: out = x + pos_embed.to(x.dtype).
        assert pos_embed.shape == (1, N, D)
        bt = _pick_batch_tile(B, 2 * N, D, itemsize)
        return pl.pallas_call(
            _pos_only_kernel,
            out_shape=jax.ShapeDtypeStruct((B, N, D), x.dtype),
            grid_spec=pltpu.PrefetchScalarGridSpec(
                num_scalar_prefetch=0,
                grid=(pl.cdiv(B, bt),),
                in_specs=[
                    pl.BlockSpec((bt, N, D), lambda i: (i, 0, 0)),
                    pl.BlockSpec((1, N, D), lambda i: (0, 0, 0)),
                ],
                out_specs=pl.BlockSpec((bt, N, D), lambda i: (i, 0, 0)),
            ),
            compiler_params=compiler_params,
        )(x, pos_embed.astype(x.dtype))

    S = N + 1
    assert cls_token.shape == (1, 1, D) and pos_embed.shape == (1, S, D)

    # Fold cls into the positional bias once (batch-independent, tiny), split
    # so the kernel never slices pos at a misaligned sublane offset.  Params
    # are cast to x.dtype first, matching PyTorch's `pos_embed.to(x.dtype)`.
    row0 = (cls_token + pos_embed[:, 0:1, :]).astype(x.dtype)   # (1, 1, D)
    pos_tail = pos_embed[:, 1:, :].astype(x.dtype)              # (1, N, D)

    bt = _pick_batch_tile(B, N + S, D, itemsize)

    return pl.pallas_call(
        _cls_pos_kernel,
        out_shape=jax.ShapeDtypeStruct((B, S, D), x.dtype),
        grid_spec=pltpu.PrefetchScalarGridSpec(
            num_scalar_prefetch=0,
            grid=(pl.cdiv(B, bt),),
            in_specs=[
                pl.BlockSpec((bt, N, D), lambda i: (i, 0, 0)),
                # Grid-invariant operands (constant index_map) -> revisited
                # block, negligible VMEM even if double-buffered.
                pl.BlockSpec((1, 1, D), lambda i: (0, 0, 0)),
                pl.BlockSpec((1, N, D), lambda i: (0, 0, 0)),
            ],
            out_specs=pl.BlockSpec((bt, S, D), lambda i: (i, 0, 0)),
        ),
        compiler_params=compiler_params,
    )(x, row0, pos_tail)


if __name__ == "__main__":
    B, num_patches, dim_embed = 2, 8, 128

    key = jax.random.PRNGKey(0)
    kx, kc, kp = jax.random.split(key, 3)

    # Deterministic synthetic parameters (PyTorch init is zeros; use nonzero
    # values so the concat/add paths are actually exercised).
    x = jax.random.normal(kx, (B, num_patches, dim_embed), dtype=jnp.float32)
    cls_token = jax.random.normal(kc, (1, 1, dim_embed), dtype=jnp.float32)
    pos_embed = jax.random.normal(
        kp, (1, 1 + num_patches, dim_embed), dtype=jnp.float32
    )

    # cls=True path (module default).
    out = jax.block_until_ready(cls_and_pos_embed(x, cls_token, pos_embed))
    ref = jnp.concatenate(
        [jnp.broadcast_to(cls_token, (B, 1, dim_embed)), x], axis=1
    ) + pos_embed.astype(x.dtype)
    assert out.shape == (B, 1 + num_patches, dim_embed)
    assert jnp.allclose(out, ref, atol=1e-6), "cls=True mismatch vs reference"

    # cls=False path.
    pos_no_cls = pos_embed[:, 1:, :]
    out2 = jax.block_until_ready(cls_and_pos_embed(x, None, pos_no_cls))
    assert jnp.allclose(out2, x + pos_no_cls, atol=1e-6), "cls=False mismatch"

    print("KERNEL_OK")
</pallas_src>

<mosaic_0001>
module attributes {stable_mosaic.version = 11 : i64} {
  func.func @_cls_pos_kernel(%arg0: i32, %arg1: memref<2x8x128xf32, #tpu.memory_space<vmem>>, %arg2: memref<1x1x128xf32, #tpu.memory_space<vmem>>, %arg3: memref<1x8x128xf32, #tpu.memory_space<vmem>>, %arg4: memref<2x9x128xf32, #tpu.memory_space<vmem>>) attributes {dimension_semantics = [#tpu.dimension_semantics<parallel>], iteration_bounds = array<i64: 1>, scalar_prefetch = 0 : i64, scratch_operands = 0 : i64, tpu.core_type = #tpu.core_type<tc>, window_params = [{transform_indices = @transform_0, window_bounds = array<i64: 2, 8, 128>}, {pipeline_mode = #tpu.pipeline_mode<synchronous>, transform_indices = @transform_1, window_bounds = array<i64: 1, 1, 128>}, {pipeline_mode = #tpu.pipeline_mode<synchronous>, transform_indices = @transform_2, window_bounds = array<i64: 1, 8, 128>}, {transform_indices = @transform_3, window_bounds = array<i64: 2, 9, 128>}]} {
    %c0 = arith.constant 0 : index
    %c0_0 = arith.constant 0 : index
    %c0_1 = arith.constant 0 : index
    %0 = vector.load %arg2[%c0, %c0_0, %c0_1] : memref<1x1x128xf32, #tpu.memory_space<vmem>>, vector<1x1x128xf32>
    %1 = vector.shape_cast %0 : vector<1x1x128xf32> to vector<1x1x128xf32>
    %2 = vector.broadcast %1 : vector<1x1x128xf32> to vector<2x1x128xf32>
    %c0_2 = arith.constant 0 : index
    %c0_3 = arith.constant 0 : index
    %c0_4 = arith.constant 0 : index
    %3 = vector.load %arg4[%c0_2, %c0_3, %c0_4] : memref<2x9x128xf32, #tpu.memory_space<vmem>>, vector<2x1x128xf32>
    tpu.vector_store %arg4[%c0_2, %c0_3, %c0_4], %2 {strides = array<i32>} : memref<2x9x128xf32, #tpu.memory_space<vmem>>, vector<2x1x128xf32>,
    %c0_5 = arith.constant 0 : index
    %c0_6 = arith.constant 0 : index
    %c0_7 = arith.constant 0 : index
    %4 = vector.load %arg1[%c0_5, %c0_6, %c0_7] : memref<2x8x128xf32, #tpu.memory_space<vmem>>, vector<2x8x128xf32>
    %c0_8 = arith.constant 0 : index
    %c0_9 = arith.constant 0 : index
    %c0_10 = arith.constant 0 : index
    %5 = vector.load %arg3[%c0_8, %c0_9, %c0_10] : memref<1x8x128xf32, #tpu.memory_space<vmem>>, vector<1x8x128xf32>
    %6 = vector.broadcast %5 : vector<1x8x128xf32> to vector<2x8x128xf32>
    %7 = arith.addf %4, %6 : vector<2x8x128xf32>
    %c0_11 = arith.constant 0 : index
    %c1 = arith.constant 1 : index
    %c0_12 = arith.constant 0 : index
    %8 = vector.load %arg4[%c0_11, %c1, %c0_12] : memref<2x9x128xf32, #tpu.memory_space<vmem>>, vector<2x8x128xf32>
    tpu.vector_store %arg4[%c0_11, %c1, %c0_12], %7 {strides = array<i32>} : memref<2x9x128xf32, #tpu.memory_space<vmem>>, vector<2x8x128xf32>,
    return
  }
  func.func @transform_0(%arg0: i32) -> (i32, i32, i32) {
    %c0_i32 = arith.constant 0 : i32
    %c0_i32_0 = arith.constant 0 : i32
    %c0_i32_1 = arith.constant 0 : i32
    return %arg0, %c0_i32, %c0_i32_0 : i32, i32, i32
  }
  func.func @transform_1(%arg0: i32) -> (i32, i32, i32) {
    %c0_i32 = arith.constant 0 : i32
    %c0_i32_0 = arith.constant 0 : i32
    %c0_i32_1 = arith.constant 0 : i32
    %c0_i32_2 = arith.constant 0 : i32
    return %c0_i32, %c0_i32_0, %c0_i32_1 : i32, i32, i32
  }
  func.func @transform_2(%arg0: i32) -> (i32, i32, i32) {
    %c0_i32 = arith.constant 0 : i32
    %c0_i32_0 = arith.constant 0 : i32
    %c0_i32_1 = arith.constant 0 : i32
    %c0_i32_2 = arith.constant 0 : i32
    return %c0_i32, %c0_i32_0, %c0_i32_1 : i32, i32, i32
  }
  func.func @transform_3(%arg0: i32) -> (i32, i32, i32) {
    %c0_i32 = arith.constant 0 : i32
    %c0_i32_0 = arith.constant 0 : i32
    %c0_i32_1 = arith.constant 0 : i32
    return %arg0, %c0_i32, %c0_i32_0 : i32, i32, i32
  }
}

</mosaic_0001>

<bundles_post_ra>
// kernel: tpu_custom_call.1
= control target key start
LH: loop header
LB: loop body
LE: loop exit
PB: predicated region body
PF: predicated region fallthrough
CT: control target
= control target key end

     0   :  { %8 = vsyncpa [#allocation3], 0  ;;  %s200_s0 = inlined_call_operand.hbm [shape: f32[2,8,128], index: 0, kind: input, shape index: {}]   ;;  %s201_s1 = inlined_call_operand.hbm [shape: f32[1,1,128], index: 1, kind: input, shape index: {}]   ;;  %s202_s2 = inlined_call_operand.hbm [shape: f32[1,8,128], index: 2, kind: input, shape index: {}]   ;;  %s203_s3 = inlined_call_operand.vmem [shape: f32[2,9,128], index: 3, kind: output, shape index: {}]  }
   0x1   :  { %9 = vsyncpa [#allocation5], 0  ;;  %s28_s14 = sshll.u32 %s201_s1, 4  ;;  %s154_s15 = smov [#allocation4]   ;;  %s29_s14 = int_to_ptr.hbm [resolvable:$true] %s28_s14 }
   0x2   :  { %s30_s16 = sshll.u32 %s154_s15, 4  ;;  %s14_s19 = sshll.u32 %s200_s0, 4  ;;  %s31_s16 = int_to_ptr.vmem [resolvable:$true] %s30_s16  ;;  %s15_s19 = int_to_ptr.hbm [resolvable:$true] %s14_s19 }
   0x3   :  { %33 = dma.hbm_to_vmem [thread:$0]  %s29_s14, 16, %s31_s16, [#allocation5]  }
   0x4   :  { %s155_s20 = smov [#allocation2]   ;;  %s156_s22 = smov 128  }
   0x5   :  { %s16_s21 = sshll.u32 %s155_s20, 4  ;;  %s157_s23 = smov 8   ;;  %s17_s21 = int_to_ptr.vmem [resolvable:$true] %s16_s21 }
   0x6   :  { %22 = dma.hbm_to_vmem [thread:$0]  %s15_s19, 256, %s17_s21, [#allocation3], %s156_s22, %s156_s22, %s157_s23  }
   0x7   :  { %s39_s1 = sshll.u32 %s202_s2, 4  ;;  %s158_s26 = smov [#allocation6]   ;;  %s40_s1 = int_to_ptr.hbm [resolvable:$true] %s39_s1 }
   0x8   :  { %s41_s27 = sshll.u32 %s158_s26, 4  ;;  %s42_s27 = int_to_ptr.vmem [resolvable:$true] %s41_s27 }
   0x9   :  { %44 = dma.hbm_to_vmem [thread:$0]  %s40_s1, 128, %s42_s27, [#allocation5]  }
   0xa   :  { %150 = dma.done.wait [#allocation3], 256  }
   0xb   :  { %151 = vsyncadd [#allocation3], 4294967040 }
   0xc   :  { %152 = dma.done.wait [#allocation5], 144  }
   0xd   :  { %153 = vsyncadd [#allocation5], 4294967152  ;;  %v57_v0 = vld [vmem:[#allocation4] sm:$0x1]  ;;  %v60_v1 = vld [vmem:[#allocation2] sm:$0xff] }
   0xe   :  { %v62_v2 = vld [vmem:[#allocation6] sm:$0xff]  ;;  %58 = vst [vmem:[%s203_s3] sm:$0x1] %v57_v0  ;;  %v61_v4 = vld [vmem:[#allocation2 + $0x8] sm:$0xff] }
   0xf   :  { %v63_v3 = vadd.f32 %v62_v2, %v60_v1  ;;  %59 = vst [vmem:[%s203_s3 + $0x10] sm:$0x1] %v57_v0  ;;  %v64_v5 = vadd.f32 %v62_v2, %v61_v4 }
  0x11   :  { %65 = vst [vmem:[%s203_s3 + $0x1] sm:$0xff] %v63_v3 }
  0x12   :  { %66 = vst [vmem:[%s203_s3 + $0x11] sm:$0xff] %v64_v5 }
  0x13   :  { %71 = vsyncpa [#allocation3], 1 }
  0x14   :  { %72 = vsyncpa [#allocation5], 1 }

</bundles_post_ra>
